<compile_context>
chip_gen: v6e
topology: v6e:2x2x1
jax: 0.10.0
libtpu: 0.0.40
codegen_flags: <defaults>
</compile_context>

<pallas_src>
import jax
import jax.numpy as jnp
from jax.experimental import pallas as pl
from jax.experimental.pallas import tpu as pltpu

SURVIVAL_PROB = 0.9

_LANE = 128
_MAX_L = 2048                      # widest lane dim per block
_TARGET_BLOCK_BYTES = 2 * 1024 * 1024   # ~2 MiB x-payload per block (v5e-safe)
_MAX_TILE_ROWS = 4096              # bounds the lane-padded (rows, 1) scale buffer


def _round_down(x, m):
    return (x // m) * m


def _round_up(x, m):
    return -(-x // m) * m


def _scale_rows_kernel(scale_ref, x_ref, o_ref):
    # scale_ref: (rows, 1) f32; x_ref/o_ref: (rows, cols) in the input dtype.
    # Multiply promotes to f32 (exact 1/survival_prob); cast only the stored
    # result back to the storage dtype.  Pure HBM-streaming elementwise scale.
    o_ref[...] = (x_ref[...] * scale_ref[...]).astype(o_ref.dtype)


def stochastic_depth_block(
    x,
    key,
    *,
    survival_prob=SURVIVAL_PROB,
    training=True,
    min_pallas_bytes=256 * 1024,
    donate_input=False,
):
    """Forward pass of StochasticDepthBlock. x: (B, C, H, W) (any trailing dims)."""
    if not training:
        return x

    B = x.shape[0]
    n = 1
    for d in x.shape[1:]:
        n *= d
    isz = x.dtype.itemsize

    # Per-sample keep decision, hoisted out of the kernel.  Scale kept in f32.
    keep = jax.random.bernoulli(key, p=survival_prob, shape=(B,))
    scale_b = keep.astype(jnp.float32) * jnp.float32(1.0 / survival_prob)  # (B,)

    # Tiny tensors: launch + per-step overhead dwarfs the two HBM passes; let XLA
    # fuse the broadcast multiply into neighbors instead.
    if x.size * isz < min_pallas_bytes:
        bshape = (B,) + (1,) * (x.ndim - 1)
        return (x * scale_b.reshape(bshape)).astype(x.dtype)

    x2 = x.reshape(B, n)
    # Packed-sublane multiple: 8 for f32, 16 for bf16, 32 for int8/fp8.
    sub_mult = 8 * max(1, 4 // isz)

    if n % _LANE == 0:
        # ---- Aligned path: fold batch into sublane rows of a lane-dense slab ----
        m = n // _LANE
        g = 1
        for k in range(_MAX_L // _LANE, 0, -1):  # largest k<=16 dividing m
            if m % k == 0:
                g = k
                break
        L = g * _LANE                 # widest 128-multiple dividing n (<= _MAX_L)
        r = n // L                    # rows per sample
        rows = B * r
        xr = x2.reshape(rows, L)
        scale_rows = (scale_b if r == 1 else jnp.repeat(scale_b, r)).reshape(rows, 1)

        target = _TARGET_BLOCK_BYTES // (L * isz)
        target = max(sub_mult, _round_down(min(target, _MAX_TILE_ROWS), sub_mult))
        tile_r = rows if rows <= target else target

        grid = (pl.cdiv(rows, tile_r),)
        in_specs = [
            pl.BlockSpec((tile_r, 1), lambda i: (i, 0)),
            pl.BlockSpec((tile_r, L), lambda i: (i, 0)),
        ]
        out_spec = pl.BlockSpec((tile_r, L), lambda i: (i, 0))
        out_shape = jax.ShapeDtypeStruct((rows, L), x.dtype)
        semantics = ("parallel",)
        args = (scale_rows, xr)
        scale_bytes = scale_rows.size * 4
    else:
        # ---- Ragged path: tile (B, n) directly; Pallas masks the lane-edge block ----
        scale_col = scale_b.reshape(B, 1)
        n_lane = _round_up(n, _LANE)
        tile_n = min(
            n_lane,
            max(_LANE, _round_down(_TARGET_BLOCK_BYTES // (8 * isz), _LANE)),
        )
        rows_fit = max(sub_mult, _TARGET_BLOCK_BYTES // (tile_n * isz))
        tile_b = B if B <= rows_fit else max(sub_mult, _round_down(rows_fit, sub_mult))

        grid = (pl.cdiv(B, tile_b), pl.cdiv(n, tile_n))
        in_specs = [
            pl.BlockSpec((tile_b, 1), lambda bi, ni: (bi, 0)),
            pl.BlockSpec((tile_b, tile_n), lambda bi, ni: (bi, ni)),
        ]
        out_spec = pl.BlockSpec((tile_b, tile_n), lambda bi, ni: (bi, ni))
        out_shape = jax.ShapeDtypeStruct((B, n), x.dtype)
        semantics = ("parallel", "parallel")
        args = (scale_col, x2)
        scale_bytes = scale_col.size * 4

    out2 = pl.pallas_call(
        _scale_rows_kernel,
        out_shape=out_shape,
        grid=grid,
        in_specs=in_specs,
        out_specs=out_spec,
        compiler_params=pltpu.CompilerParams(dimension_semantics=semantics),
        cost_estimate=pl.CostEstimate(
            flops=x.size,
            transcendentals=0,
            bytes_accessed=2 * x.size * isz + scale_bytes,
        ),
        # Aliasing only helps if the caller actually donates x (otherwise XLA
        # inserts a defensive copy), so it is opt-in.
        input_output_aliases=({1: 0} if donate_input else {}),
    )(*args)

    return out2.reshape(x.shape)


if __name__ == "__main__":
    root = jax.random.PRNGKey(0)
    kx, kmask, kx2 = jax.random.split(root, 3)

    # Aligned case: C*H*W = 1024 (multiple of 128). min_pallas_bytes=0 forces the
    # Pallas path even though this test tensor is tiny.
    x = jax.random.normal(kx, (2, 4, 16, 16), dtype=jnp.float32)
    out_train = jax.block_until_ready(
        stochastic_depth_block(x, kmask, training=True, min_pallas_bytes=0)
    )
    out_eval = jax.block_until_ready(stochastic_depth_block(x, kmask, training=False))

    # Ragged case: C*H*W = 105 (not a multiple of 128) -> masked-edge path,
    # no pad/slice round trip.
    x_rag = jax.random.normal(kx2, (2, 3, 5, 7), dtype=jnp.float32)
    out_rag = jax.block_until_ready(
        stochastic_depth_block(x_rag, kmask, training=True, min_pallas_bytes=0)
    )

    def _check(xv, ov):
        xv = jnp.asarray(xv)
        ov = jnp.asarray(ov)
        for b in range(xv.shape[0]):
            is_zero = bool(jnp.allclose(ov[b], 0.0, atol=1e-6))
            is_scaled = bool(
                jnp.allclose(ov[b], xv[b] / SURVIVAL_PROB, atol=1e-5, rtol=1e-5)
            )
            assert is_zero or is_scaled, (
                f"batch {b}: output is neither dropped nor scaled"
            )

    _check(x, out_train)
    _check(x_rag, out_rag)
    assert bool(jnp.allclose(out_eval, x)), "eval path must be identity"

    print("KERNEL_OK")
</pallas_src>

<mosaic_0001>
module attributes {stable_mosaic.version = 11 : i64} {
  func.func @_scale_rows_kernel(%arg0: i32, %arg1: memref<2x1xf32, #tpu.memory_space<vmem>>, %arg2: memref<2x1024xf32, #tpu.memory_space<vmem>>, %arg3: memref<2x1024xf32, #tpu.memory_space<vmem>>) attributes {dimension_semantics = [#tpu.dimension_semantics<parallel>], iteration_bounds = array<i64: 1>, scalar_prefetch = 0 : i64, scratch_operands = 0 : i64, tpu.core_type = #tpu.core_type<tc>, window_params = [{transform_indices = @transform_0, window_bounds = array<i64: 2, 1>}, {transform_indices = @transform_1, window_bounds = array<i64: 2, 1024>}, {transform_indices = @transform_2, window_bounds = array<i64: 2, 1024>}]} {
    %c0 = arith.constant 0 : index
    %c0_0 = arith.constant 0 : index
    %0 = vector.load %arg2[%c0, %c0_0] : memref<2x1024xf32, #tpu.memory_space<vmem>>, vector<2x1024xf32>
    %c0_1 = arith.constant 0 : index
    %c0_2 = arith.constant 0 : index
    %1 = vector.load %arg1[%c0_1, %c0_2] : memref<2x1xf32, #tpu.memory_space<vmem>>, vector<2x1xf32>
    %2 = vector.broadcast %1 : vector<2x1xf32> to vector<2x1024xf32>
    %3 = arith.mulf %0, %2 : vector<2x1024xf32>
    %c0_3 = arith.constant 0 : index
    %c0_4 = arith.constant 0 : index
    %4 = vector.load %arg3[%c0_3, %c0_4] : memref<2x1024xf32, #tpu.memory_space<vmem>>, vector<2x1024xf32>
    tpu.vector_store %arg3[%c0_3, %c0_4], %3 {strides = array<i32>} : memref<2x1024xf32, #tpu.memory_space<vmem>>, vector<2x1024xf32>,
    return
  }
  func.func @transform_0(%arg0: i32) -> (i32, i32) {
    %c0_i32 = arith.constant 0 : i32
    %c0_i32_0 = arith.constant 0 : i32
    return %arg0, %c0_i32 : i32, i32
  }
  func.func @transform_1(%arg0: i32) -> (i32, i32) {
    %c0_i32 = arith.constant 0 : i32
    %c0_i32_0 = arith.constant 0 : i32
    return %arg0, %c0_i32 : i32, i32
  }
  func.func @transform_2(%arg0: i32) -> (i32, i32) {
    %c0_i32 = arith.constant 0 : i32
    %c0_i32_0 = arith.constant 0 : i32
    return %arg0, %c0_i32 : i32, i32
  }
}

</mosaic_0001>

<bundles_post_ra>
// kernel: tpu_custom_call.1
= control target key start
LH: loop header
LB: loop body
LE: loop exit
PB: predicated region body
PF: predicated region fallthrough
CT: control target
= control target key end

     0   :  { %7 = vsyncpa [#allocation3], 0  ;;  %s135_s0 = inlined_call_operand.vmem [shape: f32[2,1], index: 0, kind: input, shape index: {}]   ;;  %s136_s1 = inlined_call_operand.hbm [shape: f32[2,1024], index: 1, kind: input, shape index: {}]   ;;  %s137_s2 = inlined_call_operand.hbm [shape: f32[2,1024], index: 2, kind: output, shape index: {}]  }
   0x1   :  { %8 = vsyncpa [#allocation4], 0  ;;  %s107_s9 = smov [#allocation2]  }
   0x2   :  { %s17_s10 = sshll.u32 %s107_s9, 4  ;;  %s18_s10 = int_to_ptr.vmem [resolvable:$true] %s17_s10 }
   0x3   :  { %s71_s11 = scalar_lea.vmem %s18_s10, 256  ;;  %p76_p1 = scmp.lt.s32.totalorder %s18_s10, %s18_s10 }
   0x4   :  { %p72_p0 = scmp.ne.s32.totalorder %s18_s10, %s71_s11  ;;  %p77_p2 = scmp.lt.s32.totalorder %s71_s11, %s71_s11 }
   0x6   :  { %p78_p3 = por %p77_p2, %p76_p1 }
   0x8   :  { %p79_p4 = pnand %p78_p3, %p72_p0 }
   0xa   :  { %82 = shalt.err (!%p79_p4)
}
   0xb   :  { %20 = dma.hbm_to_vmem [thread:$0]  %s136_s1, 256, %s18_s10, [#allocation3]  }
   0xc   :  { %103 = dma.done.wait [#allocation3], 256  }
   0xd   :  { %104 = vsyncadd [#allocation3], 4294967040  ;;  %v108_v0 = vmov 0   ;;  %v26_v1 = vld [vmem:[%s135_s0] sm:$0x3]  ;;  %v34_v4 = vlaneseq  ;;  %v25_v10 = vld [vmem:[#allocation2 + $0x8] sm:$0xff] }
   0xe   :  { %62 = vset.pattern.permute.xlu0 %v108_v0  ;;  %v109_v2 = vmov 269488144   ;;  %v24_v9 = vld [vmem:[#allocation2] sm:$0xff]  ;;  %s110_s16 = smov [#allocation5]  }
   0xf   :  { %29 = vperm.xlu0 %62, %v26_v1   ;;  %v32_v3 = vunpack.c.l.s4 %v109_v2  ;;  %v35_v6 = vshrl.u32 %v34_v4, 7  ;;  %s49_s1 = sshll.u32 %s110_s16, 4  ;;  %s50_s1 = int_to_ptr.vmem [resolvable:$true] %s49_s1 }
  0x10   :  { %s83_s17 = scalar_lea.vmem %s50_s1, 256  ;;  %p88_p6 = scmp.lt.s32.totalorder %s50_s1, %s50_s1 }
  0x11   :  { %v33_v5 = vunpack.c.0.s8 %v32_v3  ;;  %p84_p5 = scmp.ne.s32.totalorder %s50_s1, %s83_s17  ;;  %p89_p7 = scmp.lt.s32.totalorder %s83_s17, %s83_s17 }
  0x13   :  { %v36_v7 = vsub.s32 %v33_v5, %v35_v6  ;;  %p90_p8 = por %p89_p7, %p88_p6 }
  0x15   :  { %p91_p9 = pnand %p90_p8, %p84_p5 }
  0x8a   :  { %v30_v8 = vpop.permute.xlu0 %29 }
  0x8b   :  { %v37_v11 = vrot.slane %v30_v8, %v36_v7 }
  0x8d   :  { %v39_v12 = vmul.f32 %v37_v11, %v24_v9  ;;  %v40_v13 = vmul.f32 %v37_v11, %v25_v10 }
  0x8f   :  { %41 = vst [vmem:[#allocation5] sm:$0xff] %v39_v12  ;;  %42 = vst [vmem:[#allocation5 + $0x8] sm:$0xff] %v40_v13 }
  0x90   :  { %94 = shalt.err (!%p91_p9)
}
  0x91   :  { %52 = dma.vmem_to_hbm [thread:$0]  %s50_s1, 256, %s137_s2, [#allocation4]  }
  0x92   :  { %105 = dma.done.wait [#allocation4], 256  }
  0x93   :  { %106 = vsyncadd [#allocation4], 4294967040 }
  0x94   :  { %56 = vsyncpa [#allocation3], 1 }
  0x95   :  { %57 = vsyncpa [#allocation4], 1 }

</bundles_post_ra>
